<compile_context>
chip_gen: v6e
topology: v6e:2x2x1
jax: 0.10.0
libtpu: 0.0.40
codegen_flags: <defaults>
</compile_context>

<pallas_src>
import jax
import jax.numpy as jnp
from jax.experimental import pallas as pl
from jax.experimental.pallas import tpu as pltpu


_VMEM_LIMIT = 32 * 1024 * 1024  # plenty for the small double-buffered tiles below


def _round_up(x, m):
    return ((x + m - 1) // m) * m


def _cdiv(a, b):
    return (a + b - 1) // b


# -----------------------------------------------------------------------------
# Kernel 1: stem conv1 = Conv2d(1, 64, kernel=7, stride=2, padding=3, bias=False)
# lowered to a transposed, M-tiled bf16 patch matmul on the MXU.
# GeneralizedRCNNTransform normalization (mean=0.5, std=0.5) is fused into the
# im2col glue (bf16 from the first intermediate onward).
# -----------------------------------------------------------------------------
def _conv_stem_kernel(w_ref, p_ref, o_ref):
    # w_ref: (Cout_pad, K_pad) bf16, resident   p_ref: (K_pad, TM) bf16
    # o_ref: (Cout_pad, TM) bf16  (f32 accumulation, bf16 store)
    acc = jnp.dot(w_ref[...], p_ref[...], preferred_element_type=jnp.float32)
    o_ref[...] = acc.astype(o_ref.dtype)


def conv1_stem(x, weight, *, stride=2, pad=3, mean=0.5, std=0.5, tile_m=8192):
    # x: (N, Cin, H, W) f32    weight (PyTorch OIHW layout): (Cout, Cin, KH, KW) f32
    N, Cin, H, W = x.shape
    Cout, Cin_w, KH, KW = weight.shape
    assert Cin == Cin_w
    Hout = (H + 2 * pad - KH) // stride + 1
    Wout = (W + 2 * pad - KW) // stride + 1
    M = Hout * Wout
    K = Cin * KH * KW                       # 49
    K_pad = _round_up(K, 16)                # 64  (bf16 sublane pack, unmasked loads)
    Cout_pad = _round_up(Cout, 8)           # 64  (no lane padding: Cout sits on sublanes)

    # M tile: lane dimension of both the patch tile and the output tile.
    TM = min(tile_m, _round_up(M, 128))
    TM = _round_up(TM, 128)
    # v7x has 2 TensorCores: make sure the parallel grid has >= 2 steps when possible.
    if N * _cdiv(M, TM) < 2 and TM > 128:
        TM = max(128, _round_up(_cdiv(M, 2), 128))
    M_pad = _cdiv(M, TM) * TM

    # ---- transform normalize + im2col glue (plain JAX; bf16 from the start so
    #      every intermediate is half the bytes; built directly in (N,K,M)) ----
    xn = ((x - mean) * (1.0 / std)).astype(jnp.bfloat16)
    xp = jnp.pad(xn, ((0, 0), (0, 0), (pad, pad), (pad, pad)))
    cols = []
    for ci in range(Cin):
        for ky in range(KH):
            for kx in range(KW):
                cols.append(
                    xp[:, ci,
                       ky:ky + stride * Hout:stride,
                       kx:kx + stride * Wout:stride]
                )
    patches = jnp.stack(cols, axis=1).reshape(N, K, M)            # (N, K, M) bf16
    patches = jnp.pad(patches, ((0, 0), (0, K_pad - K), (0, M_pad - M)))

    w2d = weight.reshape(Cout, K)                                  # (Cout, K)
    w2d = jnp.pad(w2d, ((0, Cout_pad - Cout), (0, K_pad - K))).astype(jnp.bfloat16)

    grid = (N, M_pad // TM)
    out = pl.pallas_call(
        _conv_stem_kernel,
        out_shape=jax.ShapeDtypeStruct((N, Cout_pad, M_pad), jnp.bfloat16),
        grid=grid,
        in_specs=[
            # weight stays resident in VMEM across the whole grid
            pl.BlockSpec((Cout_pad, K_pad), lambda n, m: (0, 0)),
            # batch dim squeezed; K resident; M tiled on lanes
            pl.BlockSpec((None, K_pad, TM), lambda n, m: (n, 0, m)),
        ],
        out_specs=pl.BlockSpec((None, Cout_pad, TM), lambda n, m: (n, 0, m)),
        compiler_params=pltpu.CompilerParams(
            dimension_semantics=("parallel", "parallel"),
            vmem_limit_bytes=_VMEM_LIMIT,
        ),
    )(w2d, patches)

    # (N, Cout, M) -> (N, Cout, Hout, Wout): already NCHW, reshape is free.
    return out[:, :Cout, :M].reshape(N, Cout, Hout, Wout)


# -----------------------------------------------------------------------------
# Kernel 2: FastRCNNPredictor — cls_score + bbox_pred fused into one padded
# (F, 128) matmul, tiled over ROI rows, weights/bias resident.
# The weight/bias repack is hoisted out of the per-call path.
# -----------------------------------------------------------------------------
def _box_head_kernel(x_ref, w_ref, b_ref, o_ref):
    # x_ref: (TR, F) bf16   w_ref: (F, 128) bf16   b_ref: (1, 128) f32   o_ref: (TR, 128) f32
    o_ref[...] = (
        jnp.dot(x_ref[...], w_ref[...], preferred_element_type=jnp.float32)
        + b_ref[...]
    )


def prepare_box_head_params(wc, bc, wb, bb):
    """Run once at parameter load (outside the hot path): fuse + pad + bf16-cast."""
    n_cls = wc.shape[1]
    n_box = wb.shape[1]
    n_out = n_cls + n_box                    # 35
    n_pad = _round_up(n_out, 128)            # 128 (one MXU pass, lane-dense stores)
    w = jnp.concatenate([wc, wb], axis=1)                              # (F, 35)
    w = jnp.pad(w, ((0, 0), (0, n_pad - n_out))).astype(jnp.bfloat16)  # (F, 128)
    b = jnp.pad(jnp.concatenate([bc, bb])[None, :],
                ((0, 0), (0, n_pad - n_out))).astype(jnp.float32)      # (1, 128)
    return {"w": w, "b": b, "n_cls": n_cls, "n_box": n_box}


def box_predictor(feats, packed, *, tile_r=512):
    # feats: (R, F) f32 or bf16; packed: output of prepare_box_head_params
    R, F = feats.shape
    w, b = packed["w"], packed["b"]
    n_cls, n_box = packed["n_cls"], packed["n_box"]
    n_out = n_cls + n_box
    n_pad = w.shape[1]

    TR = min(tile_r, _round_up(R, 16))       # multiple of 16 (bf16 sublane pack)
    R_pad = _round_up(R, TR)

    x = jnp.pad(feats, ((0, R_pad - R), (0, 0)))
    if x.dtype != jnp.bfloat16:
        # upstream TwoMLPHead can hand us bf16 directly to halve this read
        x = x.astype(jnp.bfloat16)

    out = pl.pallas_call(
        _box_head_kernel,
        out_shape=jax.ShapeDtypeStruct((R_pad, n_pad), jnp.float32),
        grid=(R_pad // TR,),
        in_specs=[
            pl.BlockSpec((TR, F), lambda i: (i, 0)),      # activations, tiled over ROIs
            pl.BlockSpec((F, n_pad), lambda i: (0, 0)),   # fused weights, resident
            pl.BlockSpec((1, n_pad), lambda i: (0, 0)),   # fused bias, resident (f32)
        ],
        out_specs=pl.BlockSpec((TR, n_pad), lambda i: (i, 0)),
        compiler_params=pltpu.CompilerParams(
            dimension_semantics=("parallel",),
            vmem_limit_bytes=_VMEM_LIMIT,
        ),
    )(x, w, b)

    cls_logits = out[:R, :n_cls]
    bbox_deltas = out[:R, n_cls:n_out]
    return cls_logits, bbox_deltas


# -----------------------------------------------------------------------------
# Forward (the custom pieces of CustomRCNN.forward)
# -----------------------------------------------------------------------------
def custom_rcnn_forward(image, roi_features, params):
    # transform normalize is fused inside conv1_stem's im2col glue
    # (bilinear resize to min_size=640 omitted — see TODO at top).
    stem_feat = conv1_stem(image, params["conv1_w"], mean=0.5, std=0.5)
    # TODO(synk): ResNet50-FPN body/fpn, RPN, RoIAlign, TwoMLPHead not translated;
    # roi_features stands in for the box_head output feeding the predictor.
    cls_logits, bbox_deltas = box_predictor(roi_features, params["box_head"])
    return stem_feat, cls_logits, bbox_deltas


if __name__ == "__main__":
    key = jax.random.PRNGKey(0)
    k_img, k_w, k_roi, k_wc, k_wb = jax.random.split(key, 5)

    # Small shapes consistent with the module's forward:
    N, C, H, W = 2, 1, 16, 16          # 1-channel images (custom conv1 stem)
    n_classes = 7                       # FastRCNNPredictor(in_features, 7)
    in_features = 1024                  # box_predictor.cls_score.in_features
    num_rois = 64

    image = jax.random.uniform(k_img, (N, C, H, W), jnp.float32)

    conv1_w = jax.random.normal(k_w, (64, 1, 7, 7), jnp.float32) * 0.05
    cls_w = jax.random.normal(k_wc, (in_features, n_classes), jnp.float32) * 0.01
    cls_b = jnp.zeros((n_classes,), jnp.float32)
    bbox_w = jax.random.normal(k_wb, (in_features, 4 * n_classes), jnp.float32) * 0.001
    bbox_b = jnp.zeros((4 * n_classes,), jnp.float32)

    params = {
        "conv1_w": conv1_w,
        # fused/padded/bf16 head weights are built ONCE here, outside the hot path
        "box_head": prepare_box_head_params(cls_w, cls_b, bbox_w, bbox_b),
    }

    # Stand-in ROI box-head features (real pipeline produces these via FPN+RoIAlign).
    roi_feats = jax.random.normal(k_roi, (num_rois, in_features), jnp.float32) * 0.1

    stem_feat, cls_logits, bbox_deltas = custom_rcnn_forward(image, roi_feats, params)
    jax.block_until_ready((stem_feat, cls_logits, bbox_deltas))

    # ---- reference checks (f32 reference vs bf16-input / f32-accum kernels) ----
    xn = (image - 0.5) / 0.5
    ref_stem = jax.lax.conv_general_dilated(
        xn, conv1_w, window_strides=(2, 2), padding=((3, 3), (3, 3)),
        dimension_numbers=("NCHW", "OIHW", "NCHW"))
    ref_cls = roi_feats @ cls_w + cls_b
    ref_box = roi_feats @ bbox_w + bbox_b

    err_stem = float(jnp.max(jnp.abs(stem_feat.astype(jnp.float32) - ref_stem)))
    err_cls = float(jnp.max(jnp.abs(cls_logits - ref_cls)))
    err_box = float(jnp.max(jnp.abs(bbox_deltas - ref_box)))
    assert err_stem < 5e-2, f"stem conv mismatch: {err_stem}"
    assert err_cls < 3e-2, f"cls head mismatch: {err_cls}"
    assert err_box < 3e-2, f"bbox head mismatch: {err_box}"

    print("KERNEL_OK")
</pallas_src>

<mosaic_0001>
module attributes {stable_mosaic.version = 11 : i64} {
  func.func @_conv_stem_kernel(%arg0: i32, %arg1: i32, %arg2: memref<64x64xbf16, #tpu.memory_space<vmem>>, %arg3: memref<1x64x128xbf16, #tpu.memory_space<vmem>>, %arg4: memref<1x64x128xbf16, #tpu.memory_space<vmem>>) attributes {dimension_semantics = [#tpu.dimension_semantics<parallel>, #tpu.dimension_semantics<parallel>], iteration_bounds = array<i64: 2, 1>, scalar_prefetch = 0 : i64, scratch_operands = 0 : i64, tpu.core_type = #tpu.core_type<tc>, window_params = [{pipeline_mode = #tpu.pipeline_mode<synchronous>, transform_indices = @transform_0, window_bounds = array<i64: 64, 64>}, {transform_indices = @transform_1, window_bounds = array<i64: 1, 64, 128>}, {transform_indices = @transform_2, window_bounds = array<i64: 1, 64, 128>}]} {
    %c0 = arith.constant 0 : index
    %c0_0 = arith.constant 0 : index
    %0 = vector.load %arg2[%c0, %c0_0] : memref<64x64xbf16, #tpu.memory_space<vmem>>, vector<64x64xbf16>
    %c0_1 = arith.constant 0 : index
    %c0_2 = arith.constant 0 : index
    %c0_3 = arith.constant 0 : index
    %1 = vector.load %arg3[%c0_1, %c0_2, %c0_3] : memref<1x64x128xbf16, #tpu.memory_space<vmem>>, vector<1x64x128xbf16>
    %2 = vector.shape_cast %1 : vector<1x64x128xbf16> to vector<64x128xbf16>
    %cst = arith.constant dense<0.000000e+00> : vector<64x128xf32>
    %3 = tpu.matmul %0, %2, %cst {dimension_numbers = #tpu.dot_dimension_numbers<[1], [0], [0], [1], [0, 0, 1, 1], [], []>} : vector<64x64xbf16>, vector<64x128xbf16>, vector<64x128xf32> -> vector<64x128xf32>
    %4 = arith.truncf %3 : vector<64x128xf32> to vector<64x128xbf16>
    %c0_4 = arith.constant 0 : index
    %c0_5 = arith.constant 0 : index
    %c0_6 = arith.constant 0 : index
    %5 = vector.load %arg4[%c0_4, %c0_5, %c0_6] : memref<1x64x128xbf16, #tpu.memory_space<vmem>>, vector<1x64x128xbf16>
    %6 = vector.shape_cast %5 : vector<1x64x128xbf16> to vector<64x128xbf16>
    %7 = vector.shape_cast %4 : vector<64x128xbf16> to vector<1x64x128xbf16>
    tpu.vector_store %arg4[%c0_4, %c0_5, %c0_6], %7 {strides = array<i32>} : memref<1x64x128xbf16, #tpu.memory_space<vmem>>, vector<1x64x128xbf16>,
    return
  }
  func.func @transform_0(%arg0: i32, %arg1: i32) -> (i32, i32) {
    %c0_i32 = arith.constant 0 : i32
    %c0_i32_0 = arith.constant 0 : i32
    %c0_i32_1 = arith.constant 0 : i32
    return %c0_i32, %c0_i32_0 : i32, i32
  }
  func.func @transform_1(%arg0: i32, %arg1: i32) -> (i32, i32, i32) {
    %c0_i32 = arith.constant 0 : i32
    %c0_i32_0 = arith.constant 0 : i32
    return %arg0, %c0_i32, %arg1 : i32, i32, i32
  }
  func.func @transform_2(%arg0: i32, %arg1: i32) -> (i32, i32, i32) {
    %c0_i32 = arith.constant 0 : i32
    %c0_i32_0 = arith.constant 0 : i32
    return %arg0, %c0_i32, %arg1 : i32, i32, i32
  }
}

</mosaic_0001>

<bundles_post_ra>
// kernel: tpu_custom_call.1
= control target key start
LH: loop header
LB: loop body
LE: loop exit
PB: predicated region body
PF: predicated region fallthrough
CT: control target
= control target key end

     0   :  { %7 = vsyncpa [#allocation3], 0  ;;  %s1029_s0 = inlined_call_operand.hbm [shape: bf16[64,64], index: 0, kind: input, shape index: {}]   ;;  %s1030_s1 = inlined_call_operand.hbm [shape: bf16[2,64,128], index: 1, kind: input, shape index: {}]   ;;  %s1031_s2 = inlined_call_operand.hbm [shape: bf16[2,64,128], index: 2, kind: output, shape index: {}]  }
   0x1   :  { %8 = vsyncpa [#allocation6], 0 }
   0x2   :  { %10 = vsyncpa [#allocation6 + $0x1], 0 }
   0x3   :  { %11 = vsyncpa [#allocation4], 0 }
   0x4   :  { %13 = vsyncpa [#allocation4 + $0x1], 0  ;;  %s834_s9 = smov 0   ;;  %s836_s10 = smov 0  }
   0x5   :  { %s838_s11 = smov 0   ;;  %s840_s12 = smov 0  }
   0x6   :  { %s842_s13 = smov 0   ;;  %s844_s14 = smov 0  }
   0x7 LB: > { %s485_s15 = sadd.s32 4294967295, %s810_s14   ;;  %s486_s16 = sadd.s32 4294967294, %s810_s14   ;;  %s810_s14 = sphi %s844_s14, %s19_s14   ;;  %s806_s13 = sphi %s842_s13, %s1051_s13   ;;  %s802_s12 = sphi %s840_s12, %s1050_s12   ;;  %s798_s11 = sphi %s838_s11, %s1049_s11   ;;  %s794_s10 = sphi %s836_s10, %s1048_s10   ;;  %s790_s9 = sphi %s834_s9, %s1047_s9  }
   0x8   : > { %p74_p0 = scmp.ne.s32.totalorder %s794_s10, %s790_s9  ;;  %p868_p1 = scmp.eq.s32.totalorder %s485_s15, 0 }
   0x9   : > { %p872_p2 = scmp.eq.s32.totalorder %s485_s15, 1  ;;  %p106_p3 = scmp.eq.s32.totalorder %s486_s16, 1 }
   0xa   : > { %p878_p4 = por %p868_p1, %p74_p0  ;;  %p487_p5 = scmp.ge.s32.totalorder %s810_s14, 1 }
   0xb   : > { %p883_p6 = por %p106_p3, %p74_p0  ;;  %p113_p7 = scmp.lt.s32.totalorder %s810_s14, 3 }
   0xc   : > { %s1036_s19 = scalar_select %p878_p4, 1, 0 }
   0xd   : > { %s1037_s20 = scalar_select %p883_p6, 1, 0 }
   0xe   : > { %p888_p8 = pnand %p487_p5, %p113_p7  ;;  %s812_s22 = smov [#allocation2]  }
   0xf   : > { %s125_s23 = sshll.u32 %s812_s22, 4  ;;  %s31_s25 = sadd.s32 1, %s806_s13  ;;  %s126_s23 = int_to_ptr.vmem [resolvable:$true] %s125_s23 }
  0x10   : > { %p595_p9 = pneg %p888_p8  ;;  %s683_s26 = scalar_lea.vmem %s126_s23, 512 }
  0x11   : > { %p684_p13 = scmp.ne.s32.totalorder %s126_s23, %s683_s26  ;;  %p691_p5 = scmp.lt.s32.totalorder %s126_s23, %s126_s23 }
  0x12   : > { %p897_p11 = pnand %p595_p9, %p868_p1  ;;  %p692_p7 = scmp.lt.s32.totalorder %s683_s26, %s683_s26 }
  0x14   : > { %p674_p12 = pneg %p897_p11  ;;  %p693_p6 = por %p692_p7, %p691_p5 }
  0x16   : > { %p686_p0 = pnand %p684_p13, %p674_p12 }
  0x18   : > { %p687_p3 = pneg %p686_p0 }
  0x1a   : > { %p694_p4 = pnand %p693_p6, %p687_p3 }
  0x1c   : > { %697 = shalt.err (!%p694_p4)
}
  0x1d   : > { %s1033_s27 = smov 64   ;;  %s814_s28 = smov 4  }
  0x1e   : > { %598 = dma.hbm_to_vmem [thread:$0]  (!%p897_p11), %s1029_s0, 512, %s126_s23, [#allocation3], %s1033_s27, %s1033_s27, %s814_s28  }
  0x1f   : > { %p33_p4 = scmp.ge.s32.totalorder %s31_s25, 2  ;;  %s61_s3 = sadd.s32 1, %s798_s11 }
  0x20   : > { %p68_p6 = scmp.ne.s32.totalorder %s798_s11, %s794_s10  ;;  %p69_p9 = scmp.eq.s32.totalorder %s810_s14, 0 }
  0x21   : > { %s1053_s25 = smov (%p33_p4, %s31_s25), 0  ;;  %p608_p0 = scmp.lt.s32.totalorder %s810_s14, 2 }
  0x22   : > { %p918_p12 = por %p69_p9, %p68_p6  ;;  %p924_p13 = por %p872_p2, %p68_p6 }
  0x23   : > { %s56_s6 = ssub.s32 %s806_s13, %s1053_s25  ;;  %s139_s7 = sand.u32 1, %s798_s11  }
  0x24   : > { %p59_p11 = scmp.eq.s32.totalorder %s56_s6, 0  ;;  %s490_s8 = sshll.u32 %s139_s7, 5 }
  0x25   : > { %s522_s16 = sshll.u32 %s806_s13, 9  ;;  %s143_s26 = scalar_lea.vmem [#allocation5], %s490_s8 }
  0x26   : > { %s933_s15 = scalar_select %p59_p11, %s798_s11, %s61_s3  }
  0x27   : > { %s150_s24 = scalar_lea.hbm %s1030_s1, %s522_s16  ;;  %s151_s29 = sshll.u32 %s143_s26, 4  ;;  %s152_s29 = int_to_ptr.vmem [resolvable:$true] %s151_s29 }
  0x28   : > { %p941_p2 = pnand %p608_p0, %p918_p12  ;;  %s140_s30 = scalar_lea.sflag [#allocation6], %s139_s7 }
  0x29   : > { %s711_s6 = scalar_lea.vmem %s152_s29, 512  ;;  %s815_s3 = smov [#allocation5]  }
  0x2a   : > { %p700_p3 = pneg %p941_p2  ;;  %p712_p5 = scmp.ne.s32.totalorder %s152_s29, %s711_s6 }
  0x2b   : > { %s716_s27 = sshll.u32 %s815_s3, 4  ;;  %s717_s27 = int_to_ptr.vmem [resolvable:$false] %s716_s27 }
  0x2c   : > { %p714_p7 = pnand %p712_p5, %p700_p3  ;;  %s718_s16 = scalar_lea.vmem %s717_s27, 1024 }
  0x2d   : > { %p719_p6 = scmp.lt.s32.totalorder %s152_s29, %s717_s27  ;;  %p720_p9 = scmp.lt.s32.totalorder %s718_s16, %s711_s6 }
  0x2e   : > { %p715_p4 = pneg %p714_p7 }
  0x2f   : > { %p721_p11 = por %p720_p9, %p719_p6 }
  0x31   : > { %p722_p10 = pnand %p721_p11, %p715_p4 }
  0x33   : > { %725 = shalt.err (!%p722_p10)
}
  0x34   : > { %s1043_s4 = smov 64   ;;  %163 = sbr.rel (%p888_p8) target bundleno = 294 (0x126), region = 28 }
  0x35   : > { %602 = dma.hbm_to_vmem [thread:$0]  (!%p941_p2), %s150_s24, 512, %s152_s29, %s140_s30, %s1043_s4, %s1043_s4, %s814_s28  }
  0x39   : > { %777 = dma.done.wait (%p868_p1), [#allocation3], 512  }
  0x3a   : > { %779 = vsyncadd (%p868_p1), [#allocation3], 4294966784  ;;  %s959_s27 = sand.u32 1, %s794_s10   ;;  %p1044_p10 = scmp.ne.s32.totalorder %s1036_s19, 0 }
  0x3b   : > { %s495_s7 = sshll.u32 %s959_s27, 5  ;;  %s170_s8 = scalar_lea.sflag [#allocation6], %s959_s27 }
  0x3c   : > { %s173_s28 = scalar_lea.vmem [#allocation5], %s495_s7 }
  0x3d   : > { %781 = dma.done.wait (%p1044_p10), %s170_s8, 512  }
  0x3e   : > { %783 = vsyncadd (%p1044_p10), %s170_s8, 4294966784  ;;  %v664_v0 = vld [vmem:[%s173_s28 + $0x18] sm:$0xff]   ;;  %v665_v1 = vld [vmem:[%s173_s28 + $0x10] sm:$0xff]   ;;  %vm255_vm0 = vcmask 523264   ;;  %s193_s17 = scalar_lea.vmem [#allocation7], %s495_s7  ;;  %s531_s21 = sshll.u32 %s802_s12, 9 }
  0x3f   : > { %563 = vmatprep.subr.bf16.mxu0 %v664_v0  ;;  %579 = vmatprep.subr.bf16.mxu1 %v664_v0  ;;  %v666_v2 = vld [vmem:[%s173_s28 + $0x8] sm:$0xff]   ;;  %v668_v3 = vld [vmem:[#allocation2] sm:$0xff]   ;;  %v669_v4 = vld [vmem:[#allocation2 + $0x10] sm:$0xff]   ;;  %s388_s19 = sshll.u32 %s193_s17, 4  ;;  %s981_s24 = scalar_lea.hbm %s1031_s2, %s531_s21  ;;  %s976_s19 = int_to_ptr.vmem [resolvable:$true] %s388_s19 }
  0x40   : > { %564 = vmatpush3.bf16.msra.mxu0 %v664_v0  ;;  %583 = vmatpush3.bf16.msra.mxu1 %v664_v0  ;;  %v667_v5 = vld [vmem:[%s173_s28] sm:$0xff]   ;;  %v670_v6 = vld [vmem:[#allocation2 + $0x8] sm:$0xff]   ;;  %v671_v7 = vld [vmem:[#allocation2 + $0x18] sm:$0xff]   ;;  %s374_s12 = scalar_lea.sflag [#allocation4], %s959_s27  ;;  %s726_s26 = scalar_lea.vmem %s976_s19, 512 }
  0x41   : > { %565 = vmatprep.subr.bf16.mxu0 %v665_v1  ;;  %580 = vmatprep.subr.bf16.mxu1 %v665_v1  ;;  %p727_p1 = scmp.ne.s32.totalorder %s976_s19, %s726_s26  ;;  %s816_s29 = smov [#allocation7]  }
  0x42   : > { %571 = vmatprep.mubr.msk.bf16.mxu0 %vm255_vm0, %v668_v3  ;;  %575 = vmatprep.mubr.msk.bf16.mxu1 %vm255_vm0, %v669_v4  ;;  %s730_s18 = sshll.u32 %s816_s29, 4  ;;  %s731_s18 = int_to_ptr.vmem [resolvable:$false] %s730_s18 }
  0x43   : > { %p728_p8 = pnand %p727_p1, %p924_p13  ;;  %s732_s30 = scalar_lea.vmem %s731_s18, 1024 }
  0x44   : > { %566 = vmatpush3.bf16.msra.mxu0 %v665_v1  ;;  %584 = vmatpush3.bf16.msra.mxu1 %v665_v1  ;;  %p733_p0 = scmp.lt.s32.totalorder %s976_s19, %s731_s18  ;;  %p734_p2 = scmp.lt.s32.totalorder %s732_s30, %s726_s26 }
  0x45   : > { %567 = vmatprep.subr.bf16.mxu0 %v666_v2  ;;  %581 = vmatprep.subr.bf16.mxu1 %v666_v2  ;;  %p729_p12 = pneg %p728_p8 }
  0x46   : > { %p735_p3 = por %p734_p2, %p733_p0 }
  0x48   : > { %568 = vmatpush3.bf16.msra.mxu0 %v666_v2  ;;  %585 = vmatpush3.bf16.msra.mxu1 %v666_v2  ;;  %p736_p5 = pnand %p735_p3, %p729_p12 }
  0x49   : > { %569 = vmatprep.subr.bf16.mxu0 %v667_v5  ;;  %582 = vmatprep.subr.bf16.mxu1 %v667_v5 }
  0x4c   : > { %570 = vmatpush3.bf16.msra.mxu0 %v667_v5  ;;  %586 = vmatpush3.bf16.msra.mxu1 %v667_v5 }
  0x4f   : > { %572 = vmatmul.mubr.msk.bf16.vlgmr.msra.gmra.mxu0 %vm255_vm0, %v670_v6  ;;  %576 = vmatmul.mubr.msk.bf16.vlgmr.msra.gmra.mxu1 %vm255_vm0, %v671_v7 }
 0x10f   : > { %v573_v8 = vpop.f32.mrf.mxu0  ;;  %v577_v9 = vpop.f32.mrf.mxu1 }
 0x111   : > { %v302_v10 = vpop.f32.mrf.mxu0  ;;  %v318_v11 = vpop.f32.mrf.mxu1 }
 0x113   : > { %v574_v12 = vpop.f32.mrf.mxu0  ;;  %v578_v13 = vpop.f32.mrf.mxu1 }
 0x114   : > { %v540_v14 = vpack.c.bf16 %v574_v12, %v573_v8  ;;  %v550_v15 = vpack.c.bf16 %v578_v13, %v577_v9 }
 0x115   : > { %v305_v16 = vpop.f32.mrf.mxu0  ;;  %v321_v17 = vpop.f32.mrf.mxu1 }
 0x116   : > { %552 = vst [vmem:[%s193_s17 + $0x8] sm:$0xff] %v540_v14   ;;  %554 = vst [vmem:[%s193_s17 + $0x18] sm:$0xff] %v550_v15   ;;  %v535_v18 = vpack.c.bf16 %v305_v16, %v302_v10  ;;  %v545_v19 = vpack.c.bf16 %v321_v17, %v318_v11 }
 0x118   : > { %536 = vst [vmem:[%s193_s17] sm:$0xff] %v535_v18   ;;  %553 = vst [vmem:[%s193_s17 + $0x10] sm:$0xff] %v545_v19  }
 0x119   : > { %739 = shalt.err (!%p736_p5)
}
 0x11a   : > { %s740_s6 = scalar_lea.hbm %s981_s24, 512  ;;  %s744_s4 = scalar_lea.hbm %s1031_s2, 1024 }
 0x11b   : > { %p741_p7 = scmp.ne.s32.totalorder %s981_s24, %s740_s6  ;;  %p745_p9 = scmp.lt.s32.totalorder %s981_s24, %s1031_s2 }
 0x11c   : > { %p746_p11 = scmp.lt.s32.totalorder %s744_s4, %s740_s6 }
 0x11d   : > { %p742_p4 = pnand %p741_p7, %p924_p13 }
 0x11e   : > { %p747_p10 = por %p746_p11, %p745_p9 }
 0x11f   : > { %p743_p6 = pneg %p742_p4 }
 0x121   : > { %p748_p1 = pnand %p747_p10, %p743_p6 }
 0x123   : > { %751 = shalt.err (!%p748_p1)
}
 0x124   : > { %s817_s28 = smov 64   ;;  %s818_s17 = smov 4  }
 0x125   : > { %593 = dma.vmem_to_hbm [thread:$0]  (%p924_p13), %s976_s19, 512, %s981_s24, %s374_s12, %s817_s28, %s817_s28, %s818_s17  }
 0x126 PF: > { %s403_s21 = sand.u32 1, %s790_s9   ;;  %p1045_p8 = scmp.ne.s32.totalorder %s1037_s20, 0 }
 0x127   : > { %p1046_p12 = scmp.ge.s32.totalorder %s810_s14, 2  ;;  %s404_s22 = scalar_lea.sflag [#allocation4], %s403_s21 }
 0x129   : > { %p604_p0 = pnand %p1046_p12, %p1045_p8 }
 0x12b   : > { %p605_p2 = pneg %p604_p0 }
 0x12d   : > { %785 = dma.done.wait (%p605_p2), %s404_s22, 512  }
 0x12e   : > { %787 = vsyncadd (%p605_p2), %s404_s22, 4294966784  ;;  %s19_s14 = sadd.s32 1, %s810_s14   ;;  %s1047_s9 = smov %s794_s10 }
 0x12f   : > { %p16_p3 = scmp.ge.s32.totalorder %s19_s14, 4   ;;  %s1048_s10 = smov %s798_s11 }
 0x130   : > { %s1049_s11 = smov %s933_s15  ;;  %s1050_s12 = smov %s806_s13 }
 0x131   : > { %s1051_s13 = smov %s1053_s25  ;;  %18 = sbr.rel (!%p16_p3) target bundleno = 7 (0x7), region = 78 }
 0x136   :  { %409 = vsyncpa [#allocation3], 1 }
 0x137   :  { %411 = vsyncpa [#allocation3 + $0x1], 1 }
 0x138   :  { %412 = vsyncpa [#allocation6], 1 }
 0x139   :  { %414 = vsyncpa [#allocation6 + $0x1], 1 }
 0x13a   :  { %415 = vsyncpa [#allocation4], 1 }
 0x13b   :  { %417 = vsyncpa [#allocation4 + $0x1], 1 }

</bundles_post_ra>
